<compile_context>
chip_gen: v7x
topology: tpu7x:2x2x1
jax: 0.10.0
libtpu: 0.0.40
codegen_flags: <defaults>
</compile_context>

<pallas_src>
import functools

import jax
import jax.numpy as jnp
from jax.experimental import pallas as pl
from jax.experimental.pallas import tpu as pltpu


_LANE = 128


# ---------------------------------------------------------------------------
# Hardware / padding helpers
# ---------------------------------------------------------------------------
def _vmem_capacity_bytes():
    try:
        return int(pltpu.get_tpu_info().vmem_capacity_bytes)
    except Exception:
        return 64 * 1024 * 1024  # conservative fallback (v7x per-TensorCore VMEM)


def _round_up(v, m):
    return ((v + m - 1) // m) * m


def _pad2d(a, rows, cols):
    r, c = a.shape
    if r == rows and c == cols:
        return a
    return jnp.pad(a, ((0, rows - r), (0, cols - c)))


def _padded_n(n):
    n_pad = max(_round_up(n, _LANE), _LANE)
    if n_pad > 512:
        n_pad = _round_up(n, 512)  # pad up to the row/reduction tile target
    return n_pad


def _pick_tile(n, cap):
    for t in (1024, 512, 256, 128):
        if t <= cap and n % t == 0:
            return t
    return _LANE  # n is always a multiple of 128 here


def prepare_adjacency(adj_t):
    """Pad + cast the {0,1} adjacency to bf16 ONCE; reuse it across forward calls.

    bf16 is exact only for {0,1}-valued entries (GCNConv(normalize=False),
    unweighted edges).
    TODO(synk): keep an f32 path if a weighted / pre-normalized adjacency is used.
    """
    n = adj_t.shape[0]
    n_pad = _padded_n(n)
    return _pad2d(adj_t, n_pad, n_pad).astype(jnp.bfloat16)


# ---------------------------------------------------------------------------
# Tiled matmul kernels:  O = A @ B (+ bias) (+ ReLU)
# ---------------------------------------------------------------------------
def _matmul_bias_single_kernel(a_ref, b_ref, bias_ref, o_ref, *, apply_relu):
    # Single reduction step: no accumulator scratch, no zero-init traffic.
    out = jnp.dot(a_ref[...], b_ref[...], preferred_element_type=jnp.float32)
    out = out + bias_ref[...]
    if apply_relu:
        out = jnp.maximum(out, 0.0)
    o_ref[...] = out.astype(o_ref.dtype)


def _matmul_bias_kernel(a_ref, b_ref, bias_ref, o_ref, acc_ref, *, apply_relu):
    k = pl.program_id(1)

    @pl.when(k == 0)
    def _():
        acc_ref[...] = jnp.zeros_like(acc_ref)

    # Operands are fed at their native dtype (bf16 x bf16 for the aggregation
    # stage); accumulation is f32 via preferred_element_type.
    acc_ref[...] += jnp.dot(a_ref[...], b_ref[...],
                            preferred_element_type=jnp.float32)

    @pl.when(k == pl.num_programs(1) - 1)
    def _():
        out = acc_ref[...] + bias_ref[...]
        if apply_relu:
            out = jnp.maximum(out, 0.0)
        o_ref[...] = out.astype(o_ref.dtype)


def _matmul_bias_resident_b_kernel(a_ref, b_ref, bias_ref, o_ref, acc_ref, *,
                                   apply_relu, tk):
    # B (= H) is fully resident in VMEM; slice the current k-strip in-kernel.
    k = pl.program_id(1)

    @pl.when(k == 0)
    def _():
        acc_ref[...] = jnp.zeros_like(acc_ref)

    koff = pl.multiple_of(k * tk, tk)
    acc_ref[...] += jnp.dot(a_ref[...], b_ref[pl.ds(koff, tk), :],
                            preferred_element_type=jnp.float32)

    @pl.when(k == pl.num_programs(1) - 1)
    def _():
        out = acc_ref[...] + bias_ref[...]
        if apply_relu:
            out = jnp.maximum(out, 0.0)
        o_ref[...] = out.astype(o_ref.dtype)


def _tiled_matmul(a, b, bias, *, apply_relu, tm, tk, out_dtype,
                  resident_b, vmem_limit_bytes):
    m, kdim = a.shape
    kdim2, nf = b.shape
    assert kdim == kdim2
    assert m % tm == 0 and kdim % tk == 0
    assert nf % _LANE == 0, "output must be lane-dense (pad to multiple of 128)"

    k_steps = kdim // tk

    if k_steps == 1:
        kernel = functools.partial(_matmul_bias_single_kernel,
                                   apply_relu=apply_relu)
        return pl.pallas_call(
            kernel,
            out_shape=jax.ShapeDtypeStruct((m, nf), out_dtype),
            grid=(m // tm,),
            in_specs=[
                pl.BlockSpec((tm, kdim), lambda i: (i, 0)),
                pl.BlockSpec((kdim, nf), lambda i: (0, 0)),  # resident operand
                pl.BlockSpec((1, nf), lambda i: (0, 0)),
            ],
            out_specs=pl.BlockSpec((tm, nf), lambda i: (i, 0)),
            compiler_params=pltpu.CompilerParams(
                dimension_semantics=("parallel",),
                vmem_limit_bytes=vmem_limit_bytes),
        )(a, b, bias)

    if resident_b:
        # Whole B kept resident (constant block index) -> fetched from HBM once,
        # not once per row tile.
        kernel = functools.partial(_matmul_bias_resident_b_kernel,
                                   apply_relu=apply_relu, tk=tk)
        b_spec = pl.BlockSpec((kdim, nf), lambda i, k: (0, 0))
    else:
        kernel = functools.partial(_matmul_bias_kernel, apply_relu=apply_relu)
        b_spec = pl.BlockSpec((tk, nf), lambda i, k: (k, 0))

    # NOTE: if profiling shows exposed DMA on the adjacency stream after the
    # bf16/tiling changes, sweep pipeline_mode=pl.Buffered(3) on the A spec.
    return pl.pallas_call(
        kernel,
        out_shape=jax.ShapeDtypeStruct((m, nf), out_dtype),
        grid=(m // tm, k_steps),
        in_specs=[
            pl.BlockSpec((tm, tk), lambda i, k: (i, k)),
            b_spec,
            pl.BlockSpec((1, nf), lambda i, k: (0, 0)),
        ],
        out_specs=pl.BlockSpec((tm, nf), lambda i, k: (i, 0)),
        scratch_shapes=[pltpu.VMEM((tm, nf), jnp.float32)],
        compiler_params=pltpu.CompilerParams(
            dimension_semantics=("parallel", "arbitrary"),
            vmem_limit_bytes=vmem_limit_bytes),
    )(a, b, bias)


def _stage2_vmem_bytes(tm, tk, kdim, nf, resident_b):
    a_bytes = 2 * tm * tk * 2          # bf16 adjacency tiles, double-buffered
    out_bytes = 2 * tm * nf * 4        # f32 output tiles, double-buffered
    acc_bytes = tm * nf * 4            # f32 accumulator scratch
    bias_bytes = 2 * 8 * nf * 4
    b_bytes = (2 * kdim * nf * 2) if resident_b else (2 * tk * nf * 2)
    return a_bytes + b_bytes + out_bytes + acc_bytes + bias_bytes


# ---------------------------------------------------------------------------
# Fused whole-forward kernel for small graphs (everything in VMEM, one launch)
# ---------------------------------------------------------------------------
def _fused_forward_kernel(*refs, num_layers):
    adj_ref = refs[0]
    x_ref = refs[1]
    wb = refs[2:2 + 2 * num_layers]
    o_ref = refs[2 + 2 * num_layers]

    a = adj_ref[...]                       # bf16 {0,1} adjacency
    h = x_ref[...]                         # f32 activations
    for li in range(num_layers):
        w = wb[2 * li][...]
        b = wb[2 * li + 1][...]
        hw = jnp.dot(h, w, preferred_element_type=jnp.float32)
        agg = jnp.dot(a, hw.astype(jnp.bfloat16),
                      preferred_element_type=jnp.float32) + b
        if li < num_layers - 1:
            h = jnp.maximum(agg, 0.0)      # ReLU; dropout is identity at eval
        else:
            o_ref[...] = agg.astype(o_ref.dtype)


# ---------------------------------------------------------------------------
# Full module forward (mirrors GCN_LINK_PRED.forward, inference path)
# ---------------------------------------------------------------------------
def gcn_link_pred_forward(x, adj_t, params, *, dropout=0.5, training=False):
    """params: list of (W, b) with W: (Fin, Fout), b: (1, Fout) or (Fout,).

    adj_t may be the raw (N, N) {0,1} adjacency or the output of
    prepare_adjacency() (padded bf16), so the pad+cast can be hoisted out of
    repeated forward calls.
    """
    del dropout  # F.dropout is identity when training=False
    # TODO(synk): training-mode dropout (pltpu.prng_random_bits mask) not implemented.
    assert not training, "inference path only"

    n, fin = x.shape
    out_ch = params[-1][0].shape[1]
    num_layers = len(params)
    n_pad = _padded_n(n)

    if adj_t.shape == (n_pad, n_pad) and adj_t.dtype == jnp.bfloat16:
        adj_p = adj_t                       # already prepared (hoisted)
    else:
        assert adj_t.shape == (n, n)
        adj_p = prepare_adjacency(adj_t)

    cap = _vmem_capacity_bytes()            # 128 MiB v5e/v6e, 64 MiB v7x
    budget = int(cap * 0.6)                 # working-set budget with headroom
    vmem_limit = int(cap * 0.75)            # raised scoped-VMEM ceiling

    fin_pad = max(_round_up(fin, _LANE), _LANE)
    f_pads = [(max(_round_up(w.shape[0], _LANE), _LANE),
               max(_round_up(w.shape[1], _LANE), _LANE)) for (w, _) in params]
    assert f_pads[0][0] == fin_pad
    max_f = max(max(p) for p in f_pads)

    # --- Small-graph regime: fuse the whole multi-layer forward in one call.
    fused_bytes = (2 * n_pad * n_pad
                   + 6 * n_pad * max_f * 4
                   + sum(fi * fo * 4 + fo * 4 for fi, fo in f_pads))
    if n_pad <= 512 and max_f <= 512 and fused_bytes <= min(budget, 24 << 20):
        x_p = _pad2d(x, n_pad, fin_pad).astype(jnp.float32)
        ins = [adj_p, x_p]
        for (w, b), (fi, fo) in zip(params, f_pads):
            ins.append(_pad2d(w, fi, fo).astype(jnp.float32))
            ins.append(_pad2d(b.reshape(1, -1), 1, fo).astype(jnp.float32))
        out = pl.pallas_call(
            functools.partial(_fused_forward_kernel, num_layers=num_layers),
            out_shape=jax.ShapeDtypeStruct((n_pad, f_pads[-1][1]), jnp.float32),
            compiler_params=pltpu.CompilerParams(vmem_limit_bytes=vmem_limit),
        )(*ins)
        return out[:n, :out_ch]

    # --- Large-graph regime: two tiled pallas_calls per layer.
    nf_max = max(fo for _, fo in f_pads)
    # Prefer growing the reduction tile tk first (it only adds bf16 A bytes);
    # shrink tm first when over budget (it scales the f32 accumulator).
    tm = _pick_tile(n_pad, 512)
    tk = _pick_tile(n_pad, 1024)
    resident_b = _stage2_vmem_bytes(tm, tk, n_pad, nf_max, True) <= budget
    while _stage2_vmem_bytes(tm, tk, n_pad, nf_max, resident_b) > budget and tm > _LANE:
        tm //= 2
    while _stage2_vmem_bytes(tm, tk, n_pad, nf_max, resident_b) > budget and tk > _LANE:
        tk //= 2

    h = _pad2d(x, n_pad, fin_pad).astype(jnp.float32)
    for li, ((w, b), (f_in_pad, f_out_pad)) in enumerate(zip(params, f_pads)):
        assert h.shape[1] == f_in_pad
        w_p = _pad2d(w, f_in_pad, f_out_pad).astype(jnp.float32)
        b_p = _pad2d(b.reshape(1, -1), 1, f_out_pad).astype(jnp.float32)
        zero_bias = jnp.zeros((1, f_out_pad), jnp.float32)

        # Stage 1: HW = H @ W (computed once per layer); output in bf16 so the
        # aggregation's MXU operands are bf16 x bf16.
        tk1 = _pick_tile(f_in_pad, 1024)
        w_resident = (2 * f_in_pad * f_out_pad * 4) <= budget // 4
        hw = _tiled_matmul(h, w_p, zero_bias, apply_relu=False, tm=tm, tk=tk1,
                           out_dtype=jnp.bfloat16, resident_b=w_resident,
                           vmem_limit_bytes=vmem_limit)

        # Stage 2: OUT = A @ HW + b (bf16 x bf16 -> f32 acc); ReLU fused on all
        # but the last layer.  Zero-padded rows pick up ReLU(b) garbage, but
        # the padded adjacency COLUMNS are zero so it never contaminates real
        # rows, and the final slice drops padded rows.
        h = _tiled_matmul(adj_p, hw, b_p, apply_relu=(li < num_layers - 1),
                          tm=tm, tk=tk, out_dtype=jnp.float32,
                          resident_b=resident_b, vmem_limit_bytes=vmem_limit)

    # TODO(synk): fp8 adjacency on v7x (exact for {0,1}) not attempted; would
    # halve the dominant N^2 stream again if the fp8 dot combo lowers cleanly.
    return h[:n, :out_ch]


# ---------------------------------------------------------------------------
# Params init + plain-JAX reference
# ---------------------------------------------------------------------------
def init_params(key, in_channels, hidden_channels, out_channels, num_layers):
    """Deterministic Glorot-uniform weights, zero bias (matches GCNConv init)."""
    layer_dims = [(in_channels, hidden_channels)]
    for _ in range(num_layers - 2):
        layer_dims.append((hidden_channels, hidden_channels))
    layer_dims.append((hidden_channels, out_channels))

    params = []
    for fin, fout in layer_dims:
        key, sub = jax.random.split(key)
        limit = (6.0 / (fin + fout)) ** 0.5
        w = jax.random.uniform(sub, (fin, fout), jnp.float32, -limit, limit)
        b = jnp.zeros((1, fout), jnp.float32)
        params.append((w, b))
    return params


def reference_forward(x, adj_t, params):
    for w, b in params[:-1]:
        x = adj_t @ (x @ w) + b
        x = jnp.maximum(x, 0.0)
    w, b = params[-1]
    return adj_t @ (x @ w) + b


def _rel_err(out, ref):
    return float(jnp.max(jnp.abs(out - ref)) /
                 jnp.maximum(jnp.max(jnp.abs(ref)), 1.0))


if __name__ == "__main__":
    key = jax.random.PRNGKey(0)

    def make_case(case_key, n, in_ch, hidden, out_ch, num_layers, edge_p):
        k_x, k_adj, k_p = jax.random.split(case_key, 3)
        x = jax.random.normal(k_x, (n, in_ch), jnp.float32)
        a_rand = jax.random.uniform(k_adj, (n, n), jnp.float32)
        adj = (a_rand < edge_p).astype(jnp.float32)
        adj_t = jnp.maximum(adj, adj.T)     # symmetric {0,1}, normalize=False
        params = init_params(k_p, in_ch, hidden, out_ch, num_layers)
        return x, adj_t, params

    fwd = jax.jit(gcn_link_pred_forward)

    # Case 1: small graph -> single fused pallas_call (whole forward in VMEM).
    x1, adj1, params1 = make_case(jax.random.fold_in(key, 1),
                                  n=128, in_ch=16, hidden=32, out_ch=8,
                                  num_layers=3, edge_p=0.05)
    adj1_p = prepare_adjacency(adj1)        # hoisted pad + bf16 cast
    out1 = jax.block_until_ready(fwd(x1, adj1_p, params1))
    ref1 = reference_forward(x1, adj1, params1)
    assert out1.shape == (128, 8)
    e1 = _rel_err(out1, ref1)
    assert e1 < 3e-2, f"fused path mismatch vs reference: rel err {e1:.3e}"

    # Case 2: larger graph -> tiled path (multi-tile grid, resident H, bf16 MXU).
    x2, adj2, params2 = make_case(jax.random.fold_in(key, 2),
                                  n=1280, in_ch=100, hidden=64, out_ch=32,
                                  num_layers=3, edge_p=0.01)
    adj2_p = prepare_adjacency(adj2)
    out2 = jax.block_until_ready(fwd(x2, adj2_p, params2))
    ref2 = reference_forward(x2, adj2, params2)
    assert out2.shape == (1280, 32)
    e2 = _rel_err(out2, ref2)
    assert e2 < 3e-2, f"tiled path mismatch vs reference: rel err {e2:.3e}"

    print("KERNEL_OK")
</pallas_src>

<mosaic_0001>
module attributes {stable_mosaic.version = 11 : i64} {
  func.func @_fused_forward_kernel(%arg0: memref<128x128xbf16, #tpu.memory_space<vmem>>, %arg1: memref<128x128xf32, #tpu.memory_space<vmem>>, %arg2: memref<128x128xf32, #tpu.memory_space<vmem>>, %arg3: memref<1x128xf32, #tpu.memory_space<vmem>>, %arg4: memref<128x128xf32, #tpu.memory_space<vmem>>, %arg5: memref<1x128xf32, #tpu.memory_space<vmem>>, %arg6: memref<128x128xf32, #tpu.memory_space<vmem>>, %arg7: memref<1x128xf32, #tpu.memory_space<vmem>>, %arg8: memref<128x128xf32, #tpu.memory_space<vmem>>) attributes {dimension_semantics = [], scalar_prefetch = 0 : i64, scratch_operands = 0 : i64, tpu.core_type = #tpu.core_type<tc>} {
    %c0 = arith.constant 0 : index
    %c0_0 = arith.constant 0 : index
    %0 = vector.load %arg0[%c0, %c0_0] : memref<128x128xbf16, #tpu.memory_space<vmem>>, vector<128x128xbf16>
    %c0_1 = arith.constant 0 : index
    %c0_2 = arith.constant 0 : index
    %1 = vector.load %arg1[%c0_1, %c0_2] : memref<128x128xf32, #tpu.memory_space<vmem>>, vector<128x128xf32>
    %c0_3 = arith.constant 0 : index
    %c0_4 = arith.constant 0 : index
    %2 = vector.load %arg2[%c0_3, %c0_4] : memref<128x128xf32, #tpu.memory_space<vmem>>, vector<128x128xf32>
    %c0_5 = arith.constant 0 : index
    %c0_6 = arith.constant 0 : index
    %3 = vector.load %arg3[%c0_5, %c0_6] : memref<1x128xf32, #tpu.memory_space<vmem>>, vector<1x128xf32>
    %cst = arith.constant dense<0.000000e+00> : vector<128x128xf32>
    %4 = tpu.matmul %1, %2, %cst {dimension_numbers = #tpu.dot_dimension_numbers<[1], [0], [0], [1], [0, 0, 1, 1], [], []>} : vector<128x128xf32>, vector<128x128xf32>, vector<128x128xf32> -> vector<128x128xf32>
    %5 = arith.truncf %4 : vector<128x128xf32> to vector<128x128xbf16>
    %cst_7 = arith.constant dense<0.000000e+00> : vector<128x128xf32>
    %6 = tpu.matmul %0, %5, %cst_7 {dimension_numbers = #tpu.dot_dimension_numbers<[1], [0], [0], [1], [0, 0, 1, 1], [], []>} : vector<128x128xbf16>, vector<128x128xbf16>, vector<128x128xf32> -> vector<128x128xf32>
    %7 = vector.broadcast %3 : vector<1x128xf32> to vector<128x128xf32>
    %8 = arith.addf %6, %7 : vector<128x128xf32>
    %cst_8 = arith.constant 0.000000e+00 : f32
    %9 = vector.broadcast %cst_8 : f32 to vector<128x128xf32>
    %10 = arith.maximumf %8, %9 : vector<128x128xf32>
    %c0_9 = arith.constant 0 : index
    %c0_10 = arith.constant 0 : index
    %11 = vector.load %arg4[%c0_9, %c0_10] : memref<128x128xf32, #tpu.memory_space<vmem>>, vector<128x128xf32>
    %c0_11 = arith.constant 0 : index
    %c0_12 = arith.constant 0 : index
    %12 = vector.load %arg5[%c0_11, %c0_12] : memref<1x128xf32, #tpu.memory_space<vmem>>, vector<1x128xf32>
    %cst_13 = arith.constant dense<0.000000e+00> : vector<128x128xf32>
    %13 = tpu.matmul %10, %11, %cst_13 {dimension_numbers = #tpu.dot_dimension_numbers<[1], [0], [0], [1], [0, 0, 1, 1], [], []>} : vector<128x128xf32>, vector<128x128xf32>, vector<128x128xf32> -> vector<128x128xf32>
    %14 = arith.truncf %13 : vector<128x128xf32> to vector<128x128xbf16>
    %cst_14 = arith.constant dense<0.000000e+00> : vector<128x128xf32>
    %15 = tpu.matmul %0, %14, %cst_14 {dimension_numbers = #tpu.dot_dimension_numbers<[1], [0], [0], [1], [0, 0, 1, 1], [], []>} : vector<128x128xbf16>, vector<128x128xbf16>, vector<128x128xf32> -> vector<128x128xf32>
    %16 = vector.broadcast %12 : vector<1x128xf32> to vector<128x128xf32>
    %17 = arith.addf %15, %16 : vector<128x128xf32>
    %cst_15 = arith.constant 0.000000e+00 : f32
    %18 = vector.broadcast %cst_15 : f32 to vector<128x128xf32>
    %19 = arith.maximumf %17, %18 : vector<128x128xf32>
    %c0_16 = arith.constant 0 : index
    %c0_17 = arith.constant 0 : index
    %20 = vector.load %arg6[%c0_16, %c0_17] : memref<128x128xf32, #tpu.memory_space<vmem>>, vector<128x128xf32>
    %c0_18 = arith.constant 0 : index
    %c0_19 = arith.constant 0 : index
    %21 = vector.load %arg7[%c0_18, %c0_19] : memref<1x128xf32, #tpu.memory_space<vmem>>, vector<1x128xf32>
    %cst_20 = arith.constant dense<0.000000e+00> : vector<128x128xf32>
    %22 = tpu.matmul %19, %20, %cst_20 {dimension_numbers = #tpu.dot_dimension_numbers<[1], [0], [0], [1], [0, 0, 1, 1], [], []>} : vector<128x128xf32>, vector<128x128xf32>, vector<128x128xf32> -> vector<128x128xf32>
    %23 = arith.truncf %22 : vector<128x128xf32> to vector<128x128xbf16>
    %cst_21 = arith.constant dense<0.000000e+00> : vector<128x128xf32>
    %24 = tpu.matmul %0, %23, %cst_21 {dimension_numbers = #tpu.dot_dimension_numbers<[1], [0], [0], [1], [0, 0, 1, 1], [], []>} : vector<128x128xbf16>, vector<128x128xbf16>, vector<128x128xf32> -> vector<128x128xf32>
    %25 = vector.broadcast %21 : vector<1x128xf32> to vector<128x128xf32>
    %26 = arith.addf %24, %25 : vector<128x128xf32>
    %c0_22 = arith.constant 0 : index
    %c0_23 = arith.constant 0 : index
    %27 = vector.load %arg8[%c0_22, %c0_23] : memref<128x128xf32, #tpu.memory_space<vmem>>, vector<128x128xf32>
    tpu.vector_store %arg8[%c0_22, %c0_23], %26 {strides = array<i32>} : memref<128x128xf32, #tpu.memory_space<vmem>>, vector<128x128xf32>,
    return
  }
}

</mosaic_0001>

<bundles_post_ra>
// kernel: gcn_link_pred_forward.1
= control target key start
LH: loop header
LB: loop body
LE: loop exit
PB: predicated region body
PF: predicated region fallthrough
CT: control target
= control target key end

     0   :  { %s1862_s2 = inlined_call_operand.vmem [shape: f32[128,128], index: 2, kind: input, shape index: {}]   ;;  %s1863_s1 = inlined_call_operand.vmem [shape: f32[128,128], index: 1, kind: input, shape index: {}]   ;;  %s1864_s0 = inlined_call_operand.vmem [shape: bf16[128,128], index: 0, kind: input, shape index: {}]   ;;  %s1865_s4 = inlined_call_operand.vmem [shape: f32[128,128], index: 4, kind: input, shape index: {}]   ;;  %s1866_s3 = inlined_call_operand.vmem [shape: f32[1,128], index: 3, kind: input, shape index: {}]   ;;  %s1867_s6 = inlined_call_operand.vmem [shape: f32[128,128], index: 6, kind: input, shape index: {}]   ;;  %s1868_s5 = inlined_call_operand.vmem [shape: f32[1,128], index: 5, kind: input, shape index: {}]   ;;  %s1869_s7 = inlined_call_operand.vmem [shape: f32[1,128], index: 7, kind: input, shape index: {}]   ;;  %s1870_s8 = inlined_call_operand.vmem [shape: f32[128,128], index: 8, kind: output, shape index: {}]  }
   0x1   :  { %v62_v0 = vld [vmem:[%s1862_s2] sm:$0xff]  ;;  %v63_v1 = vld [vmem:[%s1862_s2 + $0x8] sm:$0xff]  ;;  %v64_v2 = vld [vmem:[%s1862_s2 + $0x10] sm:$0xff] }
   0x2   :  { %v1400_v3 = vpack.c.bf16 %v63_v1, %v62_v0  ;;  %v65_v4 = vld [vmem:[%s1862_s2 + $0x18] sm:$0xff]  ;;  %v66_v6 = vld [vmem:[%s1862_s2 + $0x20] sm:$0xff]  ;;  %v67_v7 = vld [vmem:[%s1862_s2 + $0x28] sm:$0xff] }
   0x3   :  { %v1404_v5 = vpack.c.bf16 %v65_v4, %v64_v2  ;;  %v1408_v8 = vpack.c.bf16 %v67_v7, %v66_v6  ;;  %v46_v9 = vld [vmem:[%s1863_s1] sm:$0xff]  ;;  %v68_v10 = vld [vmem:[%s1862_s2 + $0x30] sm:$0xff]  ;;  %v69_v11 = vld [vmem:[%s1862_s2 + $0x38] sm:$0xff] }
   0x4   :  { %1401 = vmatprep.subr.bf16.mxu0 %v1400_v3  ;;  %1168 = vmatprep.mubr.f32.mxu0 %v46_v9  ;;  %v1412_v12 = vpack.c.bf16 %v69_v11, %v68_v10  ;;  %v70_v13 = vld [vmem:[%s1862_s2 + $0x40] sm:$0xff]  ;;  %v71_v14 = vld [vmem:[%s1862_s2 + $0x48] sm:$0xff]  ;;  %v72_v16 = vld [vmem:[%s1862_s2 + $0x50] sm:$0xff] }
   0x5   :  { %1403 = vmatpush3.bf16.msra.mxu0 %v1400_v3  ;;  %v1416_v15 = vpack.c.bf16 %v71_v14, %v70_v13  ;;  %v73_v17 = vld [vmem:[%s1862_s2 + $0x58] sm:$0xff]  ;;  %v74_v19 = vld [vmem:[%s1862_s2 + $0x60] sm:$0xff]  ;;  %v75_v20 = vld [vmem:[%s1862_s2 + $0x68] sm:$0xff] }
   0x6   :  { %1405 = vmatprep.subr.bf16.mxu0 %v1404_v5  ;;  %v1420_v18 = vpack.c.bf16 %v73_v17, %v72_v16  ;;  %v1424_v21 = vpack.c.bf16 %v75_v20, %v74_v19  ;;  %v76_v22 = vld [vmem:[%s1862_s2 + $0x70] sm:$0xff]  ;;  %v77_v23 = vld [vmem:[%s1862_s2 + $0x78] sm:$0xff]  ;;  %v47_v25 = vld [vmem:[%s1863_s1 + $0x8] sm:$0xff] }
   0x7   :  { %v1428_v24 = vpack.c.bf16 %v77_v23, %v76_v22  ;;  %v48_v26 = vld [vmem:[%s1863_s1 + $0x10] sm:$0xff]  ;;  %v49_v27 = vld [vmem:[%s1863_s1 + $0x18] sm:$0xff]  ;;  %v50_v28 = vld [vmem:[%s1863_s1 + $0x20] sm:$0xff] }
   0x8   :  { %v51_v29 = vld [vmem:[%s1863_s1 + $0x28] sm:$0xff]  ;;  %v52_v30 = vld [vmem:[%s1863_s1 + $0x30] sm:$0xff]  ;;  %v53_v31 = vld [vmem:[%s1863_s1 + $0x38] sm:$0xff] }
   0x9   :  { %1407 = vmatpush3.bf16.msra.mxu0 %v1404_v5  ;;  %v54_v32 = vld [vmem:[%s1863_s1 + $0x40] sm:$0xff]  ;;  %v55_v33 = vld [vmem:[%s1863_s1 + $0x48] sm:$0xff]  ;;  %v56_v34 = vld [vmem:[%s1863_s1 + $0x50] sm:$0xff] }
   0xa   :  { %1409 = vmatprep.subr.bf16.mxu0 %v1408_v8  ;;  %v57_v35 = vld [vmem:[%s1863_s1 + $0x58] sm:$0xff]  ;;  %v58_v36 = vld [vmem:[%s1863_s1 + $0x60] sm:$0xff]  ;;  %v59_v37 = vld [vmem:[%s1863_s1 + $0x68] sm:$0xff] }
   0xb   :  { %v60_v38 = vld [vmem:[%s1863_s1 + $0x70] sm:$0xff]  ;;  %v61_v39 = vld [vmem:[%s1863_s1 + $0x78] sm:$0xff]  ;;  %v1648_v40 = vld [vmem:[%s1864_s0] sm:$0xff]  }
   0xc   :  { %1208 = vmatprep.mubr.bf16.mxu1 %v1648_v40  ;;  %v399_v41 = vld [vmem:[%s1865_s4] sm:$0xff]  ;;  %v400_v42 = vld [vmem:[%s1865_s4 + $0x8] sm:$0xff]  ;;  %v401_v43 = vld [vmem:[%s1865_s4 + $0x10] sm:$0xff] }
   0xd   :  { %1411 = vmatpush3.bf16.msra.mxu0 %v1408_v8  ;;  %v1432_v44 = vpack.c.bf16 %v400_v42, %v399_v41  ;;  %v402_v45 = vld [vmem:[%s1865_s4 + $0x18] sm:$0xff]  ;;  %v403_v47 = vld [vmem:[%s1865_s4 + $0x20] sm:$0xff]  ;;  %v404_v48 = vld [vmem:[%s1865_s4 + $0x28] sm:$0xff] }
   0xe   :  { %1413 = vmatprep.subr.bf16.mxu0 %v1412_v12  ;;  %v1436_v46 = vpack.c.bf16 %v402_v45, %v401_v43  ;;  %v1440_v49 = vpack.c.bf16 %v404_v48, %v403_v47  ;;  %v405_v50 = vld [vmem:[%s1865_s4 + $0x30] sm:$0xff]  ;;  %v406_v51 = vld [vmem:[%s1865_s4 + $0x38] sm:$0xff]  ;;  %v407_v53 = vld [vmem:[%s1865_s4 + $0x40] sm:$0xff] }
   0xf   :  { %v1444_v52 = vpack.c.bf16 %v406_v51, %v405_v50  ;;  %v408_v54 = vld [vmem:[%s1865_s4 + $0x48] sm:$0xff]  ;;  %v409_v56 = vld [vmem:[%s1865_s4 + $0x50] sm:$0xff]  ;;  %v410_v57 = vld [vmem:[%s1865_s4 + $0x58] sm:$0xff] }
  0x10   :  { %v1448_v55 = vpack.c.bf16 %v408_v54, %v407_v53  ;;  %v1452_v58 = vpack.c.bf16 %v410_v57, %v409_v56  ;;  %v1690_v19 = vld [vmem:[%s1864_s0 + $0x8] sm:$0xff]   ;;  %v1695_v20 = vld [vmem:[%s1864_s0 + $0x10] sm:$0xff]   ;;  %v1707_v22 = vld [vmem:[%s1864_s0 + $0x20] sm:$0xff]  }
  0x11   :  { %1415 = vmatpush3.bf16.msra.mxu0 %v1412_v12  ;;  %v1714_v23 = vld [vmem:[%s1864_s0 + $0x28] sm:$0xff]  }
  0x12   :  { %1417 = vmatprep.subr.bf16.mxu0 %v1416_v15 }
  0x15   :  { %1419 = vmatpush3.bf16.msra.mxu0 %v1416_v15 }
  0x16   :  { %1421 = vmatprep.subr.bf16.mxu0 %v1420_v18 }
  0x19   :  { %1423 = vmatpush3.bf16.msra.mxu0 %v1420_v18 }
  0x1a   :  { %1425 = vmatprep.subr.bf16.mxu0 %v1424_v21 }
  0x1d   :  { %1427 = vmatpush3.bf16.msra.mxu0 %v1424_v21  ;;  %v1702_v21 = vld [vmem:[%s1864_s0 + $0x18] sm:$0xff]  }
  0x1e   :  { %1429 = vmatprep.subr.bf16.mxu0 %v1428_v24 }
  0x21   :  { %1431 = vmatpush3.bf16.msra.mxu0 %v1428_v24  ;;  %v1719_v24 = vld [vmem:[%s1864_s0 + $0x30] sm:$0xff]  }
  0x22   :  { %1433 = vmatprep.subr.bf16.mxu0 %v1432_v44 }
  0x24   :  { %1169 = vmatmul.mubr.f32.vlgmr.msra.gmra.mrb[0].mxu0 %v47_v25  ;;  %v1726_v25 = vld [vmem:[%s1864_s0 + $0x38] sm:$0xff]  }
  0x25   :  { %1171 = vmatprep.mubr.f32.mxu0 %v48_v26  ;;  %1435 = vmatpush3.bf16.msra.mxu0 %v1432_v44  ;;  %v411_v26 = vld [vmem:[%s1865_s4 + $0x60] sm:$0xff] }
  0x26   :  { %1437 = vmatprep.subr.bf16.mxu0 %v1436_v46 }
  0x28   :  { %1172 = vmatmul.mubr.f32.gmra.mrb[2].mxu0 %v49_v27  ;;  %v412_v27 = vld [vmem:[%s1865_s4 + $0x68] sm:$0xff] }
  0x29   :  { %1174 = vmatprep.mubr.f32.mxu0 %v50_v28  ;;  %1439 = vmatpush3.bf16.msra.mxu0 %v1436_v46  ;;  %v1456_v28 = vpack.c.bf16 %v412_v27, %v411_v26  ;;  %v689_v26 = vld [vmem:[%s1867_s6 + $0x8] sm:$0xff]  ;;  %v690_v27 = vld [vmem:[%s1867_s6 + $0x10] sm:$0xff] }
  0x2a   :  { %1441 = vmatprep.subr.bf16.mxu0 %v1440_v49 }
  0x2c   :  { %1175 = vmatmul.mubr.f32.gmra.mrb[4].mxu0 %v51_v29  ;;  %v413_v29 = vld [vmem:[%s1865_s4 + $0x70] sm:$0xff] }
  0x2d   :  { %1177 = vmatprep.mubr.f32.mxu0 %v52_v30  ;;  %1443 = vmatpush3.bf16.msra.mxu0 %v1440_v49  ;;  %v414_v30 = vld [vmem:[%s1865_s4 + $0x78] sm:$0xff] }
  0x2e   :  { %1445 = vmatprep.subr.bf16.mxu0 %v1444_v52 }
  0x30   :  { %1178 = vmatmul.mubr.f32.gmra.mrb[6].mxu0 %v53_v31  ;;  %v1460_v31 = vpack.c.bf16 %v414_v30, %v413_v29  ;;  %v691_v29 = vld [vmem:[%s1867_s6 + $0x18] sm:$0xff] }
  0x31   :  { %1180 = vmatprep.mubr.f32.mxu0 %v54_v32  ;;  %1447 = vmatpush3.bf16.msra.mxu0 %v1444_v52  ;;  %v981_v32 = vld [vmem:[%s1866_s3] ss:$0 sm:$0xff]  ;;  %v1468_v30 = vpack.c.bf16 %v691_v29, %v690_v27 }
  0x32   :  { %1449 = vmatprep.subr.bf16.mxu0 %v1448_v55 }
  0x34   :  { %1181 = vmatmul.mubr.f32.gmra.mrb[8].mxu0 %v55_v33 }
  0x35   :  { %1183 = vmatprep.mubr.f32.mxu0 %v56_v34  ;;  %1451 = vmatpush3.bf16.msra.mxu0 %v1448_v55 }
  0x36   :  { %1453 = vmatprep.subr.bf16.mxu0 %v1452_v58 }
  0x38   :  { %1184 = vmatmul.mubr.f32.gmra.mrb[10].mxu0 %v57_v35 }
  0x39   :  { %1186 = vmatprep.mubr.f32.mxu0 %v58_v36  ;;  %1455 = vmatpush3.bf16.msra.mxu0 %v1452_v58 }
  0x3a   :  { %1457 = vmatprep.subr.bf16.mxu0 %v1456_v28 }
  0x3c   :  { %1187 = vmatmul.mubr.f32.gmra.mrb[12].mxu0 %v59_v37 }
  0x3d   :  { %1189 = vmatprep.mubr.f32.mxu0 %v60_v38  ;;  %1459 = vmatpush3.bf16.msra.mxu0 %v1456_v28 }
  0x3e   :  { %1461 = vmatprep.subr.bf16.mxu0 %v1460_v31 }
  0x40   :  { %1190 = vmatmul.mubr.f32.gmra.mrb[14].mxu0 %v61_v39 }
  0x41   :  { %1463 = vmatpush3.bf16.msra.mxu0 %v1460_v31  ;;  %v692_v31 = vld [vmem:[%s1867_s6 + $0x20] sm:$0xff] }
  0xf7   :  { %v1170_v59 = vpop.f32.mrb[0].mxu0 }
  0xf8   :  { %v145_v60 = vpop.f32.mrb[1].mxu0 }
  0xf9   :  { %v224_v61 = vpack.c.bf16 %v1170_v59, %v145_v60 }
  0xfb   :  { %v1173_v62 = vpop.f32.mrb[2].mxu0  ;;  %1192 = vmatprep.subr.bf16.mxu1 %v224_v61 }
  0xfc   :  { %v155_v63 = vpop.f32.mrb[3].mxu0  ;;  %1193 = vmatpush3.bf16.msra.mxu1 %v224_v61 }
  0xfd   :  { %v225_v0 = vpack.c.bf16 %v1173_v62, %v155_v63 }
  0xff   :  { %v1176_v1 = vpop.f32.mrb[4].mxu0  ;;  %1194 = vmatprep.subr.bf16.mxu1 %v225_v0 }
 0x100   :  { %v165_v2 = vpop.f32.mrb[5].mxu0  ;;  %1195 = vmatpush3.bf16.msra.mxu1 %v225_v0 }
 0x101   :  { %v226_v3 = vpack.c.bf16 %v1176_v1, %v165_v2 }
 0x103   :  { %v1179_v4 = vpop.f32.mrb[6].mxu0  ;;  %1196 = vmatprep.subr.bf16.mxu1 %v226_v3 }
 0x104   :  { %v175_v5 = vpop.f32.mrb[7].mxu0  ;;  %1197 = vmatpush3.bf16.msra.mxu1 %v226_v3 }
 0x105   :  { %v227_v6 = vpack.c.bf16 %v1179_v4, %v175_v5 }
 0x107   :  { %v1182_v7 = vpop.f32.mrb[8].mxu0  ;;  %1198 = vmatprep.subr.bf16.mxu1 %v227_v6 }
 0x108   :  { %v185_v8 = vpop.f32.mrb[9].mxu0  ;;  %1199 = vmatpush3.bf16.msra.mxu1 %v227_v6 }
 0x109   :  { %v228_v9 = vpack.c.bf16 %v1182_v7, %v185_v8 }
 0x10b   :  { %v1185_v10 = vpop.f32.mrb[10].mxu0  ;;  %1200 = vmatprep.subr.bf16.mxu1 %v228_v9 }
 0x10c   :  { %v195_v11 = vpop.f32.mrb[11].mxu0  ;;  %1201 = vmatpush3.bf16.msra.mxu1 %v228_v9 }
 0x10d   :  { %v229_v12 = vpack.c.bf16 %v1185_v10, %v195_v11 }
 0x10f   :  { %v1188_v13 = vpop.f32.mrb[12].mxu0  ;;  %1202 = vmatprep.subr.bf16.mxu1 %v229_v12 }
 0x110   :  { %v205_v14 = vpop.f32.mrb[13].mxu0  ;;  %1203 = vmatpush3.bf16.msra.mxu1 %v229_v12 }
 0x111   :  { %v230_v15 = vpack.c.bf16 %v1188_v13, %v205_v14 }
 0x113   :  { %v1191_v16 = vpop.f32.mrb[14].mxu0  ;;  %1204 = vmatprep.subr.bf16.mxu1 %v230_v15 }
 0x114   :  { %v215_v17 = vpop.f32.mrb[15].mxu0  ;;  %1205 = vmatpush3.bf16.msra.mxu1 %v230_v15 }
 0x115   :  { %v231_v18 = vpack.c.bf16 %v1191_v16, %v215_v17 }
 0x117   :  { %1206 = vmatprep.subr.bf16.mxu1 %v231_v18 }
 0x118   :  { %1207 = vmatpush3.bf16.msra.mxu1 %v231_v18  ;;  %v688_v18 = vld [vmem:[%s1867_s6] sm:$0xff] }
 0x119   :  { %v1464_v28 = vpack.c.bf16 %v689_v26, %v688_v18 }
 0x11b   :  { %1209 = vmatmul.mubr.bf16.vlgmr.msra.gmra.mrb[0].mxu1 %v1690_v19  ;;  %1465 = vmatprep.subr.bf16.mxu0 %v1464_v28 }
 0x11c   :  { %1212 = vmatprep.mubr.bf16.mxu1 %v1695_v20 }
 0x123   :  { %1213 = vmatmul.mubr.bf16.gmra.mrb[4].mxu1 %v1702_v21 }
 0x124   :  { %1216 = vmatprep.mubr.bf16.mxu1 %v1707_v22 }
 0x12b   :  { %1217 = vmatmul.mubr.bf16.gmra.mrb[8].mxu1 %v1714_v23 }
 0x12c   :  { %1220 = vmatprep.mubr.bf16.mxu1 %v1719_v24 }
 0x133   :  { %1221 = vmatmul.mubr.bf16.gmra.mrb[12].mxu1 %v1726_v25 }
 0x134   :  { %1296 = vmatprep.mubr.bf16.mxu1 %v1648_v40 }
 0x1ee   :  { %v1210_v33 = vpop.f32.mrb[0].mxu1 }
 0x1ef   :  { %v320_v34 = vpop.f32.mrb[1].mxu1  ;;  %v329_v37 = vadd.f32 %v1210_v33, %v981_v32 }
 0x1f0   :  { %v321_v35 = vadd.f32 %v981_v32, %v320_v34  ;;  %v1211_v36 = vpop.f32.mrb[2].mxu1  ;;  %v694_v34 = vld [vmem:[%s1867_s6 + $0x30] sm:$0xff] }
 0x1f1   :  { %v323_v38 = vpop.f32.mrb[3].mxu1  ;;  %v332_v42 = vadd.f32 %v1211_v36, %v981_v32  ;;  %v385_v44 = vmax.f32 %v329_v37, 0.0  ;;  %v696_v37 = vld [vmem:[%s1867_s6 + $0x40] sm:$0xff] }
 0x1f2   :  { %v383_v39 = vmax.f32 %v321_v35, 0.0  ;;  %v324_v41 = vadd.f32 %v981_v32, %v323_v38  ;;  %v695_v35 = vld [vmem:[%s1867_s6 + $0x38] sm:$0xff]  ;;  %v697_v38 = vld [vmem:[%s1867_s6 + $0x48] sm:$0xff] }
 0x1f3   :  { %v386_v47 = vmax.f32 %v332_v42, 0.0  ;;  %v1476_v36 = vpack.c.bf16 %v695_v35, %v694_v34  ;;  %v699_v42 = vld [vmem:[%s1867_s6 + $0x58] sm:$0xff] }
 0x1f4   :  { %v384_v43 = vmax.f32 %v324_v41, 0.0  ;;  %1256 = vmatprep.mubr.f32.mxu0 %v383_v39  ;;  %v1480_v39 = vpack.c.bf16 %v697_v38, %v696_v37  ;;  %v698_v41 = vld [vmem:[%s1867_s6 + $0x50] sm:$0xff] }
 0x1f6   :  { %v1214_v45 = vpop.f32.mrb[4].mxu1  ;;  %1257 = vmatmul.mubr.f32.vlgmr.msra.gmra.mrb[16].mxu0 %v384_v43  ;;  %v1484_v43 = vpack.c.bf16 %v699_v42, %v698_v41 }
 0x1f7   :  { %v336_v46 = vpop.f32.mrb[5].mxu1  ;;  %1259 = vmatprep.mubr.f32.mxu0 %v385_v44  ;;  %v345_v50 = vadd.f32 %v1214_v45, %v981_v32  ;;  %1467 = vmatpush3.bf16.msra.mxu0 %v1464_v28 }
 0x1f8   :  { %v337_v48 = vadd.f32 %v981_v32, %v336_v46  ;;  %v1215_v49 = vpop.f32.mrb[6].mxu1  ;;  %1469 = vmatprep.subr.bf16.mxu0 %v1468_v30 }
 0x1f9   :  { %v339_v51 = vpop.f32.mrb[7].mxu1  ;;  %v348_v54 = vadd.f32 %v1215_v49, %v981_v32  ;;  %v389_v56 = vmax.f32 %v345_v50, 0.0 }
 0x1fa   :  { %v387_v52 = vmax.f32 %v337_v48, 0.0  ;;  %v340_v53 = vadd.f32 %v981_v32, %v339_v51  ;;  %1260 = vmatmul.mubr.f32.gmra.mrb[18].mxu0 %v386_v47 }
 0x1fb   :  { %v390_v59 = vmax.f32 %v348_v54, 0.0  ;;  %1471 = vmatpush3.bf16.msra.mxu0 %v1468_v30 }
 0x1fc   :  { %v388_v55 = vmax.f32 %v340_v53, 0.0  ;;  %1262 = vmatprep.mubr.f32.mxu0 %v387_v52 }
 0x1fe   :  { %v1218_v57 = vpop.f32.mrb[8].mxu1  ;;  %1263 = vmatmul.mubr.f32.gmra.mrb[20].mxu0 %v388_v55 }
 0x1ff   :  { %v352_v58 = vpop.f32.mrb[9].mxu1  ;;  %1265 = vmatprep.mubr.f32.mxu0 %v389_v56  ;;  %v361_v62 = vadd.f32 %v1218_v57, %v981_v32 }
 0x200   :  { %v353_v60 = vadd.f32 %v981_v32, %v352_v58  ;;  %v1219_v61 = vpop.f32.mrb[10].mxu1 }
 0x201   :  { %v355_v63 = vpop.f32.mrb[11].mxu1  ;;  %v364_v2 = vadd.f32 %v1219_v61, %v981_v32  ;;  %v393_v4 = vmax.f32 %v361_v62, 0.0 }
 0x202   :  { %v391_v0 = vmax.f32 %v353_v60, 0.0  ;;  %v356_v1 = vadd.f32 %v981_v32, %v355_v63  ;;  %1266 = vmatmul.mubr.f32.gmra.mrb[22].mxu0 %v390_v59 }
 0x203   :  { %v394_v7 = vmax.f32 %v364_v2, 0.0 }
 0x204   :  { %v392_v3 = vmax.f32 %v356_v1, 0.0  ;;  %1268 = vmatprep.mubr.f32.mxu0 %v391_v0 }
 0x206   :  { %v1222_v5 = vpop.f32.mrb[12].mxu1  ;;  %1269 = vmatmul.mubr.f32.gmra.mrb[24].mxu0 %v392_v3 }
 0x207   :  { %v368_v6 = vpop.f32.mrb[13].mxu1  ;;  %1271 = vmatprep.mubr.f32.mxu0 %v393_v4  ;;  %v377_v10 = vadd.f32 %v1222_v5, %v981_v32  ;;  %v700_v4 = vld [vmem:[%s1867_s6 + $0x60] sm:$0xff]  ;;  %v701_v5 = vld [vmem:[%s1867_s6 + $0x68] sm:$0xff] }
 0x208   :  { %v369_v8 = vadd.f32 %v981_v32, %v368_v6  ;;  %v1223_v9 = vpop.f32.mrb[14].mxu1  ;;  %v1488_v6 = vpack.c.bf16 %v701_v5, %v700_v4 }
 0x209   :  { %v371_v11 = vpop.f32.mrb[15].mxu1  ;;  %v380_v14 = vadd.f32 %v1223_v9, %v981_v32  ;;  %v397_v16 = vmax.f32 %v377_v10, 0.0  ;;  %v990_v9 = vld [vmem:[%s1868_s5] ss:$0 sm:$0xff] }
 0x20a   :  { %v395_v12 = vmax.f32 %v369_v8, 0.0  ;;  %v372_v13 = vadd.f32 %v981_v32, %v371_v11  ;;  %1272 = vmatmul.mubr.f32.gmra.mrb[26].mxu0 %v394_v7  ;;  %v693_v32 = vld [vmem:[%s1867_s6 + $0x28] sm:$0xff]  ;;  %v702_v7 = vld [vmem:[%s1867_s6 + $0x70] sm:$0xff]  ;;  %v703_v8 = vld [vmem:[%s1867_s6 + $0x78] sm:$0xff] }
 0x20b   :  { %v398_v17 = vmax.f32 %v380_v14, 0.0  ;;  %v1472_v33 = vpack.c.bf16 %v693_v32, %v692_v31 }
 0x20c   :  { %v396_v15 = vmax.f32 %v372_v13, 0.0  ;;  %1274 = vmatprep.mubr.f32.mxu0 %v395_v12 }
 0x20d   :  { %1473 = vmatprep.subr.bf16.mxu0 %v1472_v33 }
 0x20e   :  { %1275 = vmatmul.mubr.f32.gmra.mrb[28].mxu0 %v396_v15 }
 0x20f   :  { %1277 = vmatprep.mubr.f32.mxu0 %v397_v16  ;;  %1475 = vmatpush3.bf16.msra.mxu0 %v1472_v33 }
 0x210   :  { %1477 = vmatprep.subr.bf16.mxu0 %v1476_v36 }
 0x212   :  { %1278 = vmatmul.mubr.f32.gmra.mrb[30].mxu0 %v398_v17 }
 0x213   :  { %1479 = vmatpush3.bf16.msra.mxu0 %v1476_v36 }
 0x214   :  { %1481 = vmatprep.subr.bf16.mxu0 %v1480_v39 }
 0x217   :  { %1483 = vmatpush3.bf16.msra.mxu0 %v1480_v39 }
 0x218   :  { %1485 = vmatprep.subr.bf16.mxu0 %v1484_v43 }
 0x21b   :  { %1487 = vmatpush3.bf16.msra.mxu0 %v1484_v43 }
 0x21c   :  { %1489 = vmatprep.subr.bf16.mxu0 %v1488_v6 }
 0x21f   :  { %1491 = vmatpush3.bf16.msra.mxu0 %v1488_v6 }
 0x2c9   :  { %v1258_v44 = vpop.f32.mrb[16].mxu0 }
 0x2ca   :  { %v482_v45 = vpop.f32.mrb[17].mxu0 }
 0x2cb   :  { %v561_v46 = vpack.c.bf16 %v1258_v44, %v482_v45 }
 0x2cd   :  { %v1261_v47 = vpop.f32.mrb[18].mxu0  ;;  %1280 = vmatprep.subr.bf16.mxu1 %v561_v46 }
 0x2ce   :  { %v492_v48 = vpop.f32.mrb[19].mxu0  ;;  %1281 = vmatpush3.bf16.msra.mxu1 %v561_v46 }
 0x2cf   :  { %v562_v49 = vpack.c.bf16 %v1261_v47, %v492_v48 }
 0x2d1   :  { %v1264_v50 = vpop.f32.mrb[20].mxu0  ;;  %1282 = vmatprep.subr.bf16.mxu1 %v562_v49 }
 0x2d2   :  { %v502_v51 = vpop.f32.mrb[21].mxu0  ;;  %1283 = vmatpush3.bf16.msra.mxu1 %v562_v49 }
 0x2d3   :  { %v563_v52 = vpack.c.bf16 %v1264_v50, %v502_v51 }
 0x2d5   :  { %v1267_v53 = vpop.f32.mrb[22].mxu0  ;;  %1284 = vmatprep.subr.bf16.mxu1 %v563_v52 }
 0x2d6   :  { %v512_v54 = vpop.f32.mrb[23].mxu0  ;;  %1285 = vmatpush3.bf16.msra.mxu1 %v563_v52 }
 0x2d7   :  { %v564_v55 = vpack.c.bf16 %v1267_v53, %v512_v54 }
 0x2d9   :  { %v1270_v56 = vpop.f32.mrb[24].mxu0  ;;  %1286 = vmatprep.subr.bf16.mxu1 %v564_v55 }
 0x2da   :  { %v522_v57 = vpop.f32.mrb[25].mxu0  ;;  %1287 = vmatpush3.bf16.msra.mxu1 %v564_v55 }
 0x2db   :  { %v565_v58 = vpack.c.bf16 %v1270_v56, %v522_v57 }
 0x2dd   :  { %v1273_v59 = vpop.f32.mrb[26].mxu0  ;;  %1288 = vmatprep.subr.bf16.mxu1 %v565_v58 }
 0x2de   :  { %v532_v60 = vpop.f32.mrb[27].mxu0  ;;  %1289 = vmatpush3.bf16.msra.mxu1 %v565_v58 }
 0x2df   :  { %v566_v61 = vpack.c.bf16 %v1273_v59, %v532_v60 }
 0x2e1   :  { %v1276_v62 = vpop.f32.mrb[28].mxu0  ;;  %1290 = vmatprep.subr.bf16.mxu1 %v566_v61 }
 0x2e2   :  { %v542_v63 = vpop.f32.mrb[29].mxu0  ;;  %1291 = vmatpush3.bf16.msra.mxu1 %v566_v61 }
 0x2e3   :  { %v567_v0 = vpack.c.bf16 %v1276_v62, %v542_v63 }
 0x2e5   :  { %v1279_v1 = vpop.f32.mrb[30].mxu0  ;;  %1292 = vmatprep.subr.bf16.mxu1 %v567_v0 }
 0x2e6   :  { %v552_v2 = vpop.f32.mrb[31].mxu0  ;;  %1293 = vmatpush3.bf16.msra.mxu1 %v567_v0 }
 0x2e7   :  { %v568_v3 = vpack.c.bf16 %v1279_v1, %v552_v2 }
 0x2e9   :  { %1294 = vmatprep.subr.bf16.mxu1 %v568_v3 }
 0x2ea   :  { %1295 = vmatpush3.bf16.msra.mxu1 %v568_v3 }
 0x2ed   :  { %1297 = vmatmul.mubr.bf16.vlgmr.msra.gmra.mrb[16].mxu1 %v1690_v19 }
 0x2ee   :  { %1300 = vmatprep.mubr.bf16.mxu1 %v1695_v20 }
 0x2f5   :  { %1301 = vmatmul.mubr.bf16.gmra.mrb[20].mxu1 %v1702_v21 }
 0x2f6   :  { %1304 = vmatprep.mubr.bf16.mxu1 %v1707_v22 }
 0x2fd   :  { %1305 = vmatmul.mubr.bf16.gmra.mrb[24].mxu1 %v1714_v23 }
 0x2fe   :  { %1308 = vmatprep.mubr.bf16.mxu1 %v1719_v24 }
 0x305   :  { %1309 = vmatmul.mubr.bf16.gmra.mrb[28].mxu1 %v1726_v25 }
 0x306   :  { %1384 = vmatprep.mubr.bf16.mxu1 %v1648_v40  ;;  %v1492_v40 = vpack.c.bf16 %v703_v8, %v702_v7 }
 0x308   :  { %1493 = vmatprep.subr.bf16.mxu0 %v1492_v40 }
 0x309   :  { %1495 = vmatpush3.bf16.msra.mxu0 %v1492_v40 }
 0x3c0   :  { %v1298_v10 = vpop.f32.mrb[16].mxu1 }
 0x3c1   :  { %v609_v11 = vpop.f32.mrb[17].mxu1  ;;  %v618_v14 = vadd.f32 %v1298_v10, %v990_v9 }
 0x3c2   :  { %v610_v12 = vadd.f32 %v990_v9, %v609_v11  ;;  %v1299_v13 = vpop.f32.mrb[18].mxu1 }
 0x3c3   :  { %v612_v15 = vpop.f32.mrb[19].mxu1  ;;  %v621_v18 = vadd.f32 %v1299_v13, %v990_v9  ;;  %v674_v27 = vmax.f32 %v618_v14, 0.0 }
 0x3c4   :  { %v672_v16 = vmax.f32 %v610_v12, 0.0  ;;  %v613_v17 = vadd.f32 %v990_v9, %v612_v15 }
 0x3c5   :  { %v675_v30 = vmax.f32 %v621_v18, 0.0 }
 0x3c6   :  { %v673_v26 = vmax.f32 %v613_v17, 0.0  ;;  %1344 = vmatprep.mubr.f32.mxu0 %v672_v16 }
 0x3c8   :  { %v1302_v28 = vpop.f32.mrb[20].mxu1  ;;  %1345 = vmatmul.mubr.f32.vlgmr.msra.gmra.mrb[32].mxu0 %v673_v26 }
 0x3c9   :  { %v625_v29 = vpop.f32.mrb[21].mxu1  ;;  %1347 = vmatprep.mubr.f32.mxu0 %v674_v27  ;;  %v634_v33 = vadd.f32 %v1302_v28, %v990_v9 }
 0x3ca   :  { %v626_v31 = vadd.f32 %v990_v9, %v625_v29  ;;  %v1303_v32 = vpop.f32.mrb[22].mxu1 }
 0x3cb   :  { %v628_v34 = vpop.f32.mrb[23].mxu1  ;;  %v637_v37 = vadd.f32 %v1303_v32, %v990_v9  ;;  %v678_v39 = vmax.f32 %v634_v33, 0.0  ;;  %v991_v32 = vld [vmem:[%s1869_s7] ss:$0 sm:$0xff] }
 0x3cc   :  { %v676_v35 = vmax.f32 %v626_v31, 0.0  ;;  %v629_v36 = vadd.f32 %v990_v9, %v628_v34  ;;  %1348 = vmatmul.mubr.f32.gmra.mrb[34].mxu0 %v675_v30 }
 0x3cd   :  { %v679_v43 = vmax.f32 %v637_v37, 0.0 }
 0x3ce   :  { %v677_v38 = vmax.f32 %v629_v36, 0.0  ;;  %1350 = vmatprep.mubr.f32.mxu0 %v676_v35 }
 0x3d0   :  { %v1306_v41 = vpop.f32.mrb[24].mxu1  ;;  %1351 = vmatmul.mubr.f32.gmra.mrb[36].mxu0 %v677_v38 }
 0x3d1   :  { %v641_v42 = vpop.f32.mrb[25].mxu1  ;;  %1353 = vmatprep.mubr.f32.mxu0 %v678_v39  ;;  %v650_v46 = vadd.f32 %v1306_v41, %v990_v9 }
 0x3d2   :  { %v642_v44 = vadd.f32 %v990_v9, %v641_v42  ;;  %v1307_v45 = vpop.f32.mrb[26].mxu1 }
 0x3d3   :  { %v644_v47 = vpop.f32.mrb[27].mxu1  ;;  %v653_v50 = vadd.f32 %v1307_v45, %v990_v9  ;;  %v682_v52 = vmax.f32 %v650_v46, 0.0 }
 0x3d4   :  { %v680_v48 = vmax.f32 %v642_v44, 0.0  ;;  %v645_v49 = vadd.f32 %v990_v9, %v644_v47  ;;  %1354 = vmatmul.mubr.f32.gmra.mrb[38].mxu0 %v679_v43 }
 0x3d5   :  { %v683_v55 = vmax.f32 %v653_v50, 0.0 }
 0x3d6   :  { %v681_v51 = vmax.f32 %v645_v49, 0.0  ;;  %1356 = vmatprep.mubr.f32.mxu0 %v680_v48 }
 0x3d8   :  { %v1310_v53 = vpop.f32.mrb[28].mxu1  ;;  %1357 = vmatmul.mubr.f32.gmra.mrb[40].mxu0 %v681_v51 }
 0x3d9   :  { %v657_v54 = vpop.f32.mrb[29].mxu1  ;;  %1359 = vmatprep.mubr.f32.mxu0 %v682_v52  ;;  %v666_v58 = vadd.f32 %v1310_v53, %v990_v9 }
 0x3da   :  { %v658_v56 = vadd.f32 %v990_v9, %v657_v54  ;;  %v1311_v57 = vpop.f32.mrb[30].mxu1 }
 0x3db   :  { %v660_v59 = vpop.f32.mrb[31].mxu1  ;;  %v669_v62 = vadd.f32 %v1311_v57, %v990_v9  ;;  %v686_v0 = vmax.f32 %v666_v58, 0.0 }
 0x3dc   :  { %v684_v60 = vmax.f32 %v658_v56, 0.0  ;;  %v661_v61 = vadd.f32 %v990_v9, %v660_v59  ;;  %1360 = vmatmul.mubr.f32.gmra.mrb[42].mxu0 %v683_v55 }
 0x3dd   :  { %v687_v1 = vmax.f32 %v669_v62, 0.0 }
 0x3de   :  { %v685_v63 = vmax.f32 %v661_v61, 0.0  ;;  %1362 = vmatprep.mubr.f32.mxu0 %v684_v60 }
 0x3e0   :  { %1363 = vmatmul.mubr.f32.gmra.mrb[44].mxu0 %v685_v63 }
 0x3e1   :  { %1365 = vmatprep.mubr.f32.mxu0 %v686_v0 }
 0x3e4   :  { %1366 = vmatmul.mubr.f32.gmra.mrb[46].mxu0 %v687_v1 }
 0x49b   :  { %v1346_v2 = vpop.f32.mrb[32].mxu0 }
 0x49c   :  { %v771_v3 = vpop.f32.mrb[33].mxu0 }
 0x49d   :  { %v850_v4 = vpack.c.bf16 %v1346_v2, %v771_v3 }
 0x49f   :  { %v1349_v5 = vpop.f32.mrb[34].mxu0  ;;  %1368 = vmatprep.subr.bf16.mxu1 %v850_v4 }
 0x4a0   :  { %v781_v6 = vpop.f32.mrb[35].mxu0  ;;  %1369 = vmatpush3.bf16.msra.mxu1 %v850_v4 }
 0x4a1   :  { %v851_v7 = vpack.c.bf16 %v1349_v5, %v781_v6 }
 0x4a3   :  { %v1352_v8 = vpop.f32.mrb[36].mxu0  ;;  %1370 = vmatprep.subr.bf16.mxu1 %v851_v7 }
 0x4a4   :  { %v791_v40 = vpop.f32.mrb[37].mxu0  ;;  %1371 = vmatpush3.bf16.msra.mxu1 %v851_v7 }
 0x4a5   :  { %v852_v9 = vpack.c.bf16 %v1352_v8, %v791_v40 }
 0x4a7   :  { %v1355_v10 = vpop.f32.mrb[38].mxu0  ;;  %1372 = vmatprep.subr.bf16.mxu1 %v852_v9 }
 0x4a8   :  { %v801_v11 = vpop.f32.mrb[39].mxu0  ;;  %1373 = vmatpush3.bf16.msra.mxu1 %v852_v9 }
 0x4a9   :  { %v853_v12 = vpack.c.bf16 %v1355_v10, %v801_v11 }
 0x4ab   :  { %v1358_v13 = vpop.f32.mrb[40].mxu0  ;;  %1374 = vmatprep.subr.bf16.mxu1 %v853_v12 }
 0x4ac   :  { %v811_v14 = vpop.f32.mrb[41].mxu0  ;;  %1375 = vmatpush3.bf16.msra.mxu1 %v853_v12 }
 0x4ad   :  { %v854_v15 = vpack.c.bf16 %v1358_v13, %v811_v14 }
 0x4af   :  { %v1361_v16 = vpop.f32.mrb[42].mxu0  ;;  %1376 = vmatprep.subr.bf16.mxu1 %v854_v15 }
 0x4b0   :  { %v821_v17 = vpop.f32.mrb[43].mxu0  ;;  %1377 = vmatpush3.bf16.msra.mxu1 %v854_v15 }
 0x4b1   :  { %v855_v18 = vpack.c.bf16 %v1361_v16, %v821_v17 }
 0x4b3   :  { %v1364_v26 = vpop.f32.mrb[44].mxu0  ;;  %1378 = vmatprep.subr.bf16.mxu1 %v855_v18 }
 0x4b4   :  { %v831_v27 = vpop.f32.mrb[45].mxu0  ;;  %1379 = vmatpush3.bf16.msra.mxu1 %v855_v18 }
 0x4b5   :  { %v856_v28 = vpack.c.bf16 %v1364_v26, %v831_v27 }
 0x4b7   :  { %v1367_v29 = vpop.f32.mrb[46].mxu0  ;;  %1380 = vmatprep.subr.bf16.mxu1 %v856_v28 }
 0x4b8   :  { %v841_v30 = vpop.f32.mrb[47].mxu0  ;;  %1381 = vmatpush3.bf16.msra.mxu1 %v856_v28 }
 0x4b9   :  { %v857_v31 = vpack.c.bf16 %v1367_v29, %v841_v30 }
 0x4bb   :  { %1382 = vmatprep.subr.bf16.mxu1 %v857_v31 }
 0x4bc   :  { %1383 = vmatpush3.bf16.msra.mxu1 %v857_v31 }
 0x4bf   :  { %1385 = vmatmul.mubr.bf16.vlgmr.msra.gmra.mrb[32].mxu1 %v1690_v19 }
 0x4c0   :  { %1388 = vmatprep.mubr.bf16.mxu1 %v1695_v20 }
 0x4c7   :  { %1389 = vmatmul.mubr.bf16.gmra.mrb[36].mxu1 %v1702_v21 }
 0x4c8   :  { %1392 = vmatprep.mubr.bf16.mxu1 %v1707_v22 }
 0x4cf   :  { %1393 = vmatmul.mubr.bf16.gmra.mrb[40].mxu1 %v1714_v23 }
 0x4d0   :  { %1396 = vmatprep.mubr.bf16.mxu1 %v1719_v24 }
 0x4d7   :  { %1397 = vmatmul.mubr.bf16.gmra.mrb[44].mxu1 %v1726_v25 }
 0x592   :  { %v1386_v33 = vpop.f32.mrb[32].mxu1 }
 0x593   :  { %v907_v34 = vadd.f32 %v1386_v33, %v991_v32  ;;  %v898_v35 = vpop.f32.mrb[33].mxu1 }
 0x594   :  { %v899_v19 = vadd.f32 %v991_v32, %v898_v35  ;;  %v1387_v36 = vpop.f32.mrb[34].mxu1 }
 0x595   :  { %963 = vst [vmem:[%s1870_s8 + $0x10] sm:$0xff] %v907_v34  ;;  %v910_v20 = vadd.f32 %v1387_v36, %v991_v32  ;;  %v901_v21 = vpop.f32.mrb[35].mxu1 }
 0x596   :  { %961 = vst [vmem:[%s1870_s8] sm:$0xff] %v899_v19  ;;  %v902_v22 = vadd.f32 %v991_v32, %v901_v21 }
 0x597   :  { %964 = vst [vmem:[%s1870_s8 + $0x18] sm:$0xff] %v910_v20 }
 0x598   :  { %962 = vst [vmem:[%s1870_s8 + $0x8] sm:$0xff] %v902_v22 }
 0x59a   :  { %v1390_v23 = vpop.f32.mrb[36].mxu1 }
 0x59b   :  { %v923_v24 = vadd.f32 %v1390_v23, %v991_v32  ;;  %v914_v25 = vpop.f32.mrb[37].mxu1 }
 0x59c   :  { %v915_v37 = vadd.f32 %v991_v32, %v914_v25  ;;  %v1391_v38 = vpop.f32.mrb[38].mxu1 }
 0x59d   :  { %967 = vst [vmem:[%s1870_s8 + $0x30] sm:$0xff] %v923_v24  ;;  %v926_v39 = vadd.f32 %v1391_v38, %v991_v32  ;;  %v917_v41 = vpop.f32.mrb[39].mxu1 }
 0x59e   :  { %965 = vst [vmem:[%s1870_s8 + $0x20] sm:$0xff] %v915_v37  ;;  %v918_v42 = vadd.f32 %v991_v32, %v917_v41 }
 0x59f   :  { %968 = vst [vmem:[%s1870_s8 + $0x38] sm:$0xff] %v926_v39 }
 0x5a0   :  { %966 = vst [vmem:[%s1870_s8 + $0x28] sm:$0xff] %v918_v42 }
 0x5a2   :  { %v1394_v43 = vpop.f32.mrb[40].mxu1 }
 0x5a3   :  { %v939_v44 = vadd.f32 %v1394_v43, %v991_v32  ;;  %v930_v45 = vpop.f32.mrb[41].mxu1 }
 0x5a4   :  { %v931_v46 = vadd.f32 %v991_v32, %v930_v45  ;;  %v1395_v47 = vpop.f32.mrb[42].mxu1 }
 0x5a5   :  { %971 = vst [vmem:[%s1870_s8 + $0x50] sm:$0xff] %v939_v44  ;;  %v942_v48 = vadd.f32 %v1395_v47, %v991_v32  ;;  %v933_v49 = vpop.f32.mrb[43].mxu1 }
 0x5a6   :  { %969 = vst [vmem:[%s1870_s8 + $0x40] sm:$0xff] %v931_v46  ;;  %v934_v50 = vadd.f32 %v991_v32, %v933_v49 }
 0x5a7   :  { %972 = vst [vmem:[%s1870_s8 + $0x58] sm:$0xff] %v942_v48 }
 0x5a8   :  { %970 = vst [vmem:[%s1870_s8 + $0x48] sm:$0xff] %v934_v50 }
 0x5aa   :  { %v1398_v51 = vpop.f32.mrb[44].mxu1 }
 0x5ab   :  { %v955_v52 = vadd.f32 %v1398_v51, %v991_v32  ;;  %v946_v53 = vpop.f32.mrb[45].mxu1 }
 0x5ac   :  { %v947_v54 = vadd.f32 %v991_v32, %v946_v53  ;;  %v1399_v55 = vpop.f32.mrb[46].mxu1 }
 0x5ad   :  { %975 = vst [vmem:[%s1870_s8 + $0x70] sm:$0xff] %v955_v52  ;;  %v958_v56 = vadd.f32 %v1399_v55, %v991_v32  ;;  %v949_v57 = vpop.f32.mrb[47].mxu1 }
 0x5ae   :  { %973 = vst [vmem:[%s1870_s8 + $0x60] sm:$0xff] %v947_v54  ;;  %v950_v58 = vadd.f32 %v991_v32, %v949_v57 }
 0x5af   :  { %976 = vst [vmem:[%s1870_s8 + $0x78] sm:$0xff] %v958_v56 }
 0x5b0   :  { %974 = vst [vmem:[%s1870_s8 + $0x68] sm:$0xff] %v950_v58 }

</bundles_post_ra>
